<compile_context>
chip_gen: v5e
topology: v5e:2x2
jax: 0.10.0
libtpu: 0.0.40
codegen_flags: <defaults>
</compile_context>

<pallas_src>
import functools

import jax
import jax.numpy as jnp
from jax import lax
from jax.experimental import pallas as pl
from jax.experimental.pallas import tpu as pltpu

_LANE = 128     # lane-axis alignment (last dim)
_SUBLANE = 16   # sublane alignment covering bf16 (16) and f32 (8) tiling
_M_TILE = 256   # MXU M-tile granularity for large batch blocks


def _round_up(v, m):
  return (v + m - 1) // m * m


def _time_para_rnn_kernel(
    x_ref,
    w1_ref, b1_ref,
    w2_ref, b2_ref,
    wh_ref, bh_ref,
    out_ref,
    acc_ref,
    *,
    output_dim,
):
  """Fused 2-layer MLP + tightly packed (weight||bias) head.

  Grid = (batch_tiles, hidden_k_tiles).  The hidden (k) axis is an "arbitrary"
  reduction axis: each step computes one k-slice of the layer-1 activation and
  accumulates its layer-2 contribution into acc_ref; the last k step applies
  bias+relu, runs the head matmul, masks/squares the weight half and stores
  one packed, lane-dense output tile.
  """
  k = pl.program_id(1)
  nk = pl.num_programs(1)

  @pl.when(k == 0)
  def _():
    acc_ref[...] = jnp.zeros_like(acc_ref)

  # Layer 1, k-slice of the hidden dim:  h1_k = relu(x @ w1[:, k] + b1[k])
  x = x_ref[...]                                      # bf16 [block_b, input_dim]
  h1 = jnp.dot(x, w1_ref[...], preferred_element_type=jnp.float32) + b1_ref[...]
  h1 = jnp.maximum(h1, 0.0).astype(jnp.bfloat16)      # [block_b, block_k]

  # Layer 2 partial reduction over the hidden dim: acc += h1_k @ w2[k, :]
  acc_ref[...] += jnp.dot(h1, w2_ref[...], preferred_element_type=jnp.float32)

  @pl.when(k == nk - 1)
  def _():
    h2 = jnp.maximum(acc_ref[...] + b2_ref[...], 0.0).astype(jnp.bfloat16)
    # hidden_drop (p=0.1) is identity in eval mode.
    # TODO(synk): training-mode dropout (stateful PRNG masking) not implemented.

    # Fused, tightly packed heads: cols [0, output_dim) = linear_weight,
    # cols [output_dim, 2*output_dim) = linear_bias, remainder = zero padding.
    heads = (jnp.dot(h2, wh_ref[...], preferred_element_type=jnp.float32)
             + bh_ref[...])
    col = lax.broadcasted_iota(jnp.int32, heads.shape, dimension=1)
    out_ref[...] = jnp.where(col < output_dim,
                             heads * heads + 1e-7,    # weight half: w**2 + eps
                             heads                    # bias half (+ padding)
                             ).astype(out_ref.dtype)


def _prepare_params(params, hidden_p, head_w, output_dim):
  """Zero-pads feature dims, tightly packs the two heads, casts matmul weights
  to bf16 (biases stay f32).  Zero-padding is exact."""
  w1, b1 = params["w1"], params["b1"]
  w2, b2 = params["w2"], params["b2"]
  ww, bw = params["ww"], params["bw"]
  wb, bb = params["wb"], params["bb"]
  input_dim, hidden_dim = w1.shape

  def pad2(a, rows, cols, dtype):
    return jnp.pad(a, ((0, rows - a.shape[0]),
                       (0, cols - a.shape[1]))).astype(dtype)

  w1p = pad2(w1, input_dim, hidden_p, jnp.bfloat16)
  b1p = pad2(b1, 1, hidden_p, jnp.float32)
  w2p = pad2(w2, hidden_p, hidden_p, jnp.bfloat16)
  b2p = pad2(b2, 1, hidden_p, jnp.float32)

  # Tightly packed head weight: cols [0:output_dim] = linear_weight,
  # cols [output_dim:2*output_dim] = linear_bias, rest zero.
  whp = jnp.zeros((hidden_p, head_w), jnp.float32)
  whp = whp.at[:hidden_dim, :output_dim].set(ww)
  whp = whp.at[:hidden_dim, output_dim:2 * output_dim].set(wb)
  whp = whp.astype(jnp.bfloat16)

  bhp = jnp.zeros((1, head_w), jnp.float32)
  bhp = bhp.at[:, :output_dim].set(bw)
  bhp = bhp.at[:, output_dim:2 * output_dim].set(bb)

  return w1p, b1p, w2p, b2p, whp, bhp


def _vmem_budget_bytes():
  """Per-generation VMEM request budget (physical capacity minus headroom)."""
  try:
    cap = int(getattr(pltpu.get_tpu_info(), "vmem_capacity_bytes", 64 << 20))
  except Exception:
    cap = 64 << 20                           # conservative: v7x per-TC size
  if cap <= (64 << 20):                      # v7x: 64 MiB per TensorCore
    return max(cap - (12 << 20), 16 << 20)
  return min(cap - (28 << 20), 100 << 20)    # v5e / v6e: 128 MiB physical


def _pick_block_k(input_dim, hidden_p, head_w, block_b, vmem_budget, block_k):
  """Hidden-dim (K) tile.  block_k == hidden_p means no K tiling (all weights
  fit single-buffered); otherwise w1-columns / w2-rows stream in
  double-buffered block_k slabs."""
  if block_k is not None:
    return min(_round_up(block_k, _LANE), _round_up(hidden_p, _LANE))

  def per_k_bytes(bk):
    # k-varying blocks: w1[:, bk] (bf16) + b1[:, bk] (f32) + w2[bk, :] (bf16)
    return input_dim * bk * 2 + bk * 4 + bk * hidden_p * 2

  invariant = hidden_p * head_w * 2 + head_w * 4 + hidden_p * 4
  io = 2 * block_b * input_dim * 2 + 2 * block_b * head_w * 4
  acc_bytes = block_b * hidden_p * 4
  fixed = invariant + io + acc_bytes + (4 << 20)

  if fixed + per_k_bytes(hidden_p) <= vmem_budget:
    return hidden_p                                   # no K tiling needed
  for bk in (4096, 2048, 1024, 512, 256, 128):
    if bk < hidden_p and fixed + 2 * per_k_bytes(bk) <= vmem_budget:
      return bk
  return _LANE


def time_para_rnn_forward(x, params, *, flownum, flowlen,
                          block_b=None, block_k=None):
  """TimeParaRNN forward (eval mode) as a single fused Pallas kernel.

  Args:
    x: [B, input_dim] float32.
    params: dict with transposed weights (in, out) and biases (1, out), f32.
  Returns:
    (weight, bias): each reshaped to (-1, flownum, flowlen), matching the
    PyTorch module's .view(-1, flownum, flowlen); weight = w**2 + 1e-7.
  """
  B, input_dim = x.shape
  hidden_dim = params["w1"].shape[1]
  output_dim = params["ww"].shape[1]
  assert output_dim == flownum * flowlen, "output_dim must equal flownum*flowlen"

  hidden_p = _round_up(hidden_dim, _LANE)
  head_w = _round_up(2 * output_dim, _LANE)   # packed (weight || bias) width

  # --- batch tiling: large MXU-aligned tiles, >= 4 steps when batch allows ---
  B_a = _round_up(B, _SUBLANE)
  if block_b is None:
    block_b = min(512, B_a)
    if B_a // block_b < 4 and B_a >= 4 * _SUBLANE:
      block_b = _round_up(pl.cdiv(B_a, 4), _SUBLANE)
    if block_b >= _M_TILE:
      block_b = (block_b // _M_TILE) * _M_TILE
  else:
    block_b = _round_up(max(_SUBLANE, min(block_b, B_a)), _SUBLANE)
  B_total = _round_up(B_a, block_b)
  grid_b = B_total // block_b

  # --- hidden (K) tiling, driven by the per-generation VMEM budget ---
  vmem_budget = _vmem_budget_bytes()
  block_k = _pick_block_k(input_dim, hidden_p, head_w, block_b,
                          vmem_budget, block_k)
  hidden_p = _round_up(hidden_p, block_k)
  k_tiles = hidden_p // block_k

  w1p, b1p, w2p, b2p, whp, bhp = _prepare_params(params, hidden_p, head_w,
                                                 output_dim)
  # Pad batch with zero rows; cast matmul input to bf16 (halves DMA).
  x_p = jnp.pad(x.astype(jnp.bfloat16), ((0, B_total - B), (0, 0)))

  # --- explicit VMEM accounting ---
  per_k = input_dim * block_k * 2 + block_k * 4 + block_k * hidden_p * 2
  kvary = per_k if k_tiles == 1 else 2 * per_k          # dbl-buffered if tiled
  invariant = hidden_p * head_w * 2 + head_w * 4 + hidden_p * 4
  io = 2 * block_b * input_dim * 2 + 2 * block_b * head_w * 4
  acc_bytes = block_b * hidden_p * 4
  vmem_need = kvary + invariant + io + acc_bytes + (4 << 20)
  vmem_limit = int(min(max(vmem_need, 16 << 20), vmem_budget))

  # --- advisory cost estimate for XLA's scheduler ---
  flops = 2 * B_total * (input_dim * hidden_p + hidden_p * hidden_p
                         + hidden_p * head_w)
  param_bytes = sum(int(a.size) * a.dtype.itemsize
                    for a in (w1p, b1p, w2p, b2p, whp, bhp))
  weight_reads = param_bytes * (grid_b if k_tiles > 1 else 1)
  io_bytes = int(x_p.size) * x_p.dtype.itemsize + B_total * head_w * 4
  cost = pl.CostEstimate(flops=flops, transcendentals=0,
                         bytes_accessed=weight_reads + io_bytes)

  def run(single_buffer_invariants):
    inv_kw = ({"pipeline_mode": pl.Buffered(1)}
              if single_buffer_invariants else {})
    kvar_kw = inv_kw if k_tiles == 1 else {}
    in_specs = [
        pl.BlockSpec((block_b, input_dim), lambda i, k: (i, 0)),              # x
        pl.BlockSpec((input_dim, block_k), lambda i, k: (0, k), **kvar_kw),   # w1
        pl.BlockSpec((1, block_k), lambda i, k: (0, k), **kvar_kw),           # b1
        pl.BlockSpec((block_k, hidden_p), lambda i, k: (k, 0), **kvar_kw),    # w2
        pl.BlockSpec((1, hidden_p), lambda i, k: (0, 0), **inv_kw),           # b2
        pl.BlockSpec((hidden_p, head_w), lambda i, k: (0, 0), **inv_kw),      # ww||wb
        pl.BlockSpec((1, head_w), lambda i, k: (0, 0), **inv_kw),             # bw||bb
    ]
    out_specs = pl.BlockSpec((block_b, head_w), lambda i, k: (i, 0))
    return pl.pallas_call(
        functools.partial(_time_para_rnn_kernel, output_dim=output_dim),
        out_shape=jax.ShapeDtypeStruct((B_total, head_w), jnp.float32),
        grid_spec=pltpu.PrefetchScalarGridSpec(
            num_scalar_prefetch=0,
            grid=(grid_b, k_tiles),
            in_specs=in_specs,
            out_specs=out_specs,
            scratch_shapes=[pltpu.VMEM((block_b, hidden_p), jnp.float32)],
        ),
        compiler_params=pltpu.CompilerParams(
            dimension_semantics=("parallel", "arbitrary"),
            vmem_limit_bytes=vmem_limit,
        ),
        cost_estimate=cost,
    )(x_p, w1p, b1p, w2p, b2p, whp, bhp)

  try:
    packed = run(True)
  except Exception:
    # Fallback if this jax build rejects single-buffered (Buffered(1)) specs.
    packed = run(False)

  # Glue: strip batch/lane padding, split the packed heads, mimic torch .view.
  weight = packed[:B, :output_dim].reshape(-1, flownum, flowlen)
  bias = packed[:B, output_dim:2 * output_dim].reshape(-1, flownum, flowlen)
  return weight, bias


def init_params(key, input_dim, hidden_dim, output_dim):
  """PyTorch-Linear-style init (uniform(-1/sqrt(fan_in), +1/sqrt(fan_in))).
  Weights already transposed to (in, out); biases as (1, out); f32."""
  ks = jax.random.split(key, 8)

  def lin(kw, kb, fan_in, fan_out):
    bound = 1.0 / jnp.sqrt(fan_in)
    w = jax.random.uniform(kw, (fan_out, fan_in), jnp.float32, -bound, bound)
    b = jax.random.uniform(kb, (fan_out,), jnp.float32, -bound, bound)
    return w.T, b.reshape(1, fan_out)

  w1, b1 = lin(ks[0], ks[1], input_dim, hidden_dim)
  w2, b2 = lin(ks[2], ks[3], hidden_dim, hidden_dim)
  ww, bw = lin(ks[4], ks[5], hidden_dim, output_dim)
  wb, bb = lin(ks[6], ks[7], hidden_dim, output_dim)
  return dict(w1=w1, b1=b1, w2=w2, b2=b2, ww=ww, bw=bw, wb=wb, bb=bb)


def reference_forward(x, params, *, flownum, flowlen, matmul_dtype=jnp.float32):
  """Pure-JAX reference mirroring the PyTorch module (eval mode).
  matmul_dtype=bf16 emulates the kernel's numerics; f32 is exact semantics."""
  def mm(a, w):
    return lax.dot(a.astype(matmul_dtype), w.astype(matmul_dtype),
                   preferred_element_type=jnp.float32)

  h = jnp.maximum(mm(x, params["w1"]) + params["b1"], 0.0)
  h = jnp.maximum(mm(h, params["w2"]) + params["b2"], 0.0)
  w = mm(h, params["ww"]) + params["bw"]
  b = mm(h, params["wb"]) + params["bb"]
  w = w.reshape(-1, flownum, flowlen) ** 2 + 1e-7
  b = b.reshape(-1, flownum, flowlen)
  return w, b


if __name__ == "__main__":

  def check(name, got, want, atol, rtol):
    assert jnp.allclose(got, want, atol=atol, rtol=rtol), f"{name} mismatch"

  def run_case(key, *, batch, input_dim, hidden_dim, flownum, flowlen, **kw):
    output_dim = flownum * flowlen
    kx, kp = jax.random.split(key)
    x = jax.random.normal(kx, (batch, input_dim), jnp.float32)
    params = init_params(kp, input_dim, hidden_dim, output_dim)

    weight, bias = time_para_rnn_forward(x, params, flownum=flownum,
                                         flowlen=flowlen, **kw)
    jax.block_until_ready((weight, bias))
    assert weight.shape == (batch, flownum, flowlen)
    assert bias.shape == (batch, flownum, flowlen)

    # Tight check vs bf16-matmul / f32-accumulate reference (same numerics);
    # loose check vs the pure-f32 reference (module semantics).
    w_bf, b_bf = reference_forward(x, params, flownum=flownum, flowlen=flowlen,
                                   matmul_dtype=jnp.bfloat16)
    check("bf16-ref weight", weight, w_bf, 2e-3, 2e-3)
    check("bf16-ref bias", bias, b_bf, 2e-3, 2e-3)
    w_f, b_f = reference_forward(x, params, flownum=flownum, flowlen=flowlen,
                                 matmul_dtype=jnp.float32)
    check("f32-ref weight", weight, w_f, 5e-2, 5e-2)
    check("f32-ref bias", bias, b_f, 5e-2, 5e-2)

  k1, k2 = jax.random.split(jax.random.PRNGKey(0))

  # Case 1: small shapes consistent with the module; default (un-K-tiled) path.
  run_case(k1, batch=8, input_dim=16, hidden_dim=32, flownum=4, flowlen=8)

  # Case 2: forces the K-tiled hidden reduction (hidden_p=256, block_k=128 ->
  # 2 k steps) plus a multi-step batch grid, validating the accumulator and
  # tight-packed-head / lane-mask paths against the same references.
  run_case(k2, batch=40, input_dim=16, hidden_dim=200, flownum=4, flowlen=8,
           block_b=16, block_k=128)

  print("KERNEL_OK")
</pallas_src>

<mosaic_0001>
module attributes {stable_mosaic.version = 11 : i64} {
  func.func @_time_para_rnn_kernel(%arg0: i32, %arg1: i32, %arg2: memref<16x16xbf16, #tpu.memory_space<vmem>>, %arg3: memref<16x128xbf16, #tpu.memory_space<vmem>>, %arg4: memref<1x128xf32, #tpu.memory_space<vmem>>, %arg5: memref<128x128xbf16, #tpu.memory_space<vmem>>, %arg6: memref<1x128xf32, #tpu.memory_space<vmem>>, %arg7: memref<128x128xbf16, #tpu.memory_space<vmem>>, %arg8: memref<1x128xf32, #tpu.memory_space<vmem>>, %arg9: memref<16x128xf32, #tpu.memory_space<vmem>>, %arg10: memref<16x128xf32, #tpu.memory_space<vmem>>) attributes {dimension_semantics = [#tpu.dimension_semantics<parallel>, #tpu.dimension_semantics<arbitrary>], iteration_bounds = array<i64: 1, 1>, scalar_prefetch = 0 : i64, scratch_operands = 1 : i64, tpu.core_type = #tpu.core_type<tc>, window_params = [{transform_indices = @transform_0, window_bounds = array<i64: 16, 16>}, {pipeline_mode = #tpu.pipeline_mode<synchronous>, transform_indices = @transform_1, window_bounds = array<i64: 16, 128>}, {pipeline_mode = #tpu.pipeline_mode<synchronous>, transform_indices = @transform_2, window_bounds = array<i64: 1, 128>}, {pipeline_mode = #tpu.pipeline_mode<synchronous>, transform_indices = @transform_3, window_bounds = array<i64: 128, 128>}, {pipeline_mode = #tpu.pipeline_mode<synchronous>, transform_indices = @transform_4, window_bounds = array<i64: 1, 128>}, {pipeline_mode = #tpu.pipeline_mode<synchronous>, transform_indices = @transform_5, window_bounds = array<i64: 128, 128>}, {pipeline_mode = #tpu.pipeline_mode<synchronous>, transform_indices = @transform_6, window_bounds = array<i64: 1, 128>}, {transform_indices = @transform_7, window_bounds = array<i64: 16, 128>}]} {
    %c0_i32 = arith.constant 0 : i32
    %0 = arith.cmpi eq, %arg1, %c0_i32 : i32
    %1 = arith.extui %0 : i1 to i32
    %c0_i32_0 = arith.constant 0 : i32
    %2 = arith.cmpi ne, %1, %c0_i32_0 : i32
    scf.if %2 {
      %cst_16 = arith.constant 0.000000e+00 : f32
      %20 = vector.broadcast %cst_16 : f32 to vector<16x128xf32>
      %c0_17 = arith.constant 0 : index
      %c0_18 = arith.constant 0 : index
      %21 = vector.load %arg10[%c0_17, %c0_18] : memref<16x128xf32, #tpu.memory_space<vmem>>, vector<16x128xf32>
      tpu.vector_store %arg10[%c0_17, %c0_18], %20 {strides = array<i32>} : memref<16x128xf32, #tpu.memory_space<vmem>>, vector<16x128xf32>,
    } else {
    }
    %c0 = arith.constant 0 : index
    %c0_1 = arith.constant 0 : index
    %3 = vector.load %arg2[%c0, %c0_1] : memref<16x16xbf16, #tpu.memory_space<vmem>>, vector<16x16xbf16>
    %c0_2 = arith.constant 0 : index
    %c0_3 = arith.constant 0 : index
    %4 = vector.load %arg3[%c0_2, %c0_3] : memref<16x128xbf16, #tpu.memory_space<vmem>>, vector<16x128xbf16>
    %cst = arith.constant dense<0.000000e+00> : vector<16x128xf32>
    %5 = tpu.matmul %3, %4, %cst {dimension_numbers = #tpu.dot_dimension_numbers<[1], [0], [0], [1], [0, 0, 1, 1], [], []>} : vector<16x16xbf16>, vector<16x128xbf16>, vector<16x128xf32> -> vector<16x128xf32>
    %c0_4 = arith.constant 0 : index
    %c0_5 = arith.constant 0 : index
    %6 = vector.load %arg4[%c0_4, %c0_5] : memref<1x128xf32, #tpu.memory_space<vmem>>, vector<1x128xf32>
    %7 = vector.broadcast %6 : vector<1x128xf32> to vector<16x128xf32>
    %8 = arith.addf %5, %7 : vector<16x128xf32>
    %cst_6 = arith.constant 0.000000e+00 : f32
    %9 = vector.broadcast %cst_6 : f32 to vector<16x128xf32>
    %10 = arith.maximumf %8, %9 : vector<16x128xf32>
    %11 = arith.truncf %10 : vector<16x128xf32> to vector<16x128xbf16>
    %c0_7 = arith.constant 0 : index
    %c0_8 = arith.constant 0 : index
    %12 = vector.load %arg10[%c0_7, %c0_8] : memref<16x128xf32, #tpu.memory_space<vmem>>, vector<16x128xf32>
    %c0_9 = arith.constant 0 : index
    %c0_10 = arith.constant 0 : index
    %13 = vector.load %arg5[%c0_9, %c0_10] : memref<128x128xbf16, #tpu.memory_space<vmem>>, vector<128x128xbf16>
    %cst_11 = arith.constant dense<0.000000e+00> : vector<16x128xf32>
    %14 = tpu.matmul %11, %13, %cst_11 {dimension_numbers = #tpu.dot_dimension_numbers<[1], [0], [0], [1], [0, 0, 1, 1], [], []>} : vector<16x128xbf16>, vector<128x128xbf16>, vector<16x128xf32> -> vector<16x128xf32>
    %15 = arith.addf %12, %14 : vector<16x128xf32>
    %c0_12 = arith.constant 0 : index
    %c0_13 = arith.constant 0 : index
    %16 = vector.load %arg10[%c0_12, %c0_13] : memref<16x128xf32, #tpu.memory_space<vmem>>, vector<16x128xf32>
    tpu.vector_store %arg10[%c0_12, %c0_13], %15 {strides = array<i32>} : memref<16x128xf32, #tpu.memory_space<vmem>>, vector<16x128xf32>,
    %c0_i32_14 = arith.constant 0 : i32
    %17 = arith.cmpi eq, %arg1, %c0_i32_14 : i32
    %18 = arith.extui %17 : i1 to i32
    %c0_i32_15 = arith.constant 0 : i32
    %19 = arith.cmpi ne, %18, %c0_i32_15 : i32
    scf.if %19 {
      %c0_16 = arith.constant 0 : index
      %c0_17 = arith.constant 0 : index
      %20 = vector.load %arg10[%c0_16, %c0_17] : memref<16x128xf32, #tpu.memory_space<vmem>>, vector<16x128xf32>
      %c0_18 = arith.constant 0 : index
      %c0_19 = arith.constant 0 : index
      %21 = vector.load %arg6[%c0_18, %c0_19] : memref<1x128xf32, #tpu.memory_space<vmem>>, vector<1x128xf32>
      %22 = vector.broadcast %21 : vector<1x128xf32> to vector<16x128xf32>
      %23 = arith.addf %20, %22 : vector<16x128xf32>
      %cst_20 = arith.constant 0.000000e+00 : f32
      %24 = vector.broadcast %cst_20 : f32 to vector<16x128xf32>
      %25 = arith.maximumf %23, %24 : vector<16x128xf32>
      %26 = arith.truncf %25 : vector<16x128xf32> to vector<16x128xbf16>
      %c0_21 = arith.constant 0 : index
      %c0_22 = arith.constant 0 : index
      %27 = vector.load %arg7[%c0_21, %c0_22] : memref<128x128xbf16, #tpu.memory_space<vmem>>, vector<128x128xbf16>
      %cst_23 = arith.constant dense<0.000000e+00> : vector<16x128xf32>
      %28 = tpu.matmul %26, %27, %cst_23 {dimension_numbers = #tpu.dot_dimension_numbers<[1], [0], [0], [1], [0, 0, 1, 1], [], []>} : vector<16x128xbf16>, vector<128x128xbf16>, vector<16x128xf32> -> vector<16x128xf32>
      %c0_24 = arith.constant 0 : index
      %c0_25 = arith.constant 0 : index
      %29 = vector.load %arg8[%c0_24, %c0_25] : memref<1x128xf32, #tpu.memory_space<vmem>>, vector<1x128xf32>
      %30 = vector.broadcast %29 : vector<1x128xf32> to vector<16x128xf32>
      %31 = arith.addf %28, %30 : vector<16x128xf32>
      %32 = tpu.iota {dimensions = array<i32: 1>} : vector<16x128xi32>
      %c32_i32 = arith.constant 32 : i32
      %33 = vector.broadcast %c32_i32 : i32 to vector<16x128xi32>
      %34 = arith.cmpi slt, %32, %33 : vector<16x128xi32>
      %35 = arith.mulf %31, %31 : vector<16x128xf32>
      %cst_26 = arith.constant 1.000000e-07 : f32
      %36 = vector.broadcast %cst_26 : f32 to vector<16x128xf32>
      %37 = arith.addf %35, %36 : vector<16x128xf32>
      %38 = arith.select %34, %37, %31 : vector<16x128xi1>, vector<16x128xf32>
      %c0_27 = arith.constant 0 : index
      %c0_28 = arith.constant 0 : index
      %39 = vector.load %arg9[%c0_27, %c0_28] : memref<16x128xf32, #tpu.memory_space<vmem>>, vector<16x128xf32>
      tpu.vector_store %arg9[%c0_27, %c0_28], %38 {strides = array<i32>} : memref<16x128xf32, #tpu.memory_space<vmem>>, vector<16x128xf32>,
    } else {
    }
    return
  }
  func.func @transform_0(%arg0: i32, %arg1: i32) -> (i32, i32) {
    %c0_i32 = arith.constant 0 : i32
    %c0_i32_0 = arith.constant 0 : i32
    return %arg0, %c0_i32 : i32, i32
  }
  func.func @transform_1(%arg0: i32, %arg1: i32) -> (i32, i32) {
    %c0_i32 = arith.constant 0 : i32
    %c0_i32_0 = arith.constant 0 : i32
    return %c0_i32, %arg1 : i32, i32
  }
  func.func @transform_2(%arg0: i32, %arg1: i32) -> (i32, i32) {
    %c0_i32 = arith.constant 0 : i32
    %c0_i32_0 = arith.constant 0 : i32
    return %c0_i32, %arg1 : i32, i32
  }
  func.func @transform_3(%arg0: i32, %arg1: i32) -> (i32, i32) {
    %c0_i32 = arith.constant 0 : i32
    %c0_i32_0 = arith.constant 0 : i32
    return %arg1, %c0_i32 : i32, i32
  }
  func.func @transform_4(%arg0: i32, %arg1: i32) -> (i32, i32) {
    %c0_i32 = arith.constant 0 : i32
    %c0_i32_0 = arith.constant 0 : i32
    %c0_i32_1 = arith.constant 0 : i32
    return %c0_i32, %c0_i32_0 : i32, i32
  }
  func.func @transform_5(%arg0: i32, %arg1: i32) -> (i32, i32) {
    %c0_i32 = arith.constant 0 : i32
    %c0_i32_0 = arith.constant 0 : i32
    %c0_i32_1 = arith.constant 0 : i32
    return %c0_i32, %c0_i32_0 : i32, i32
  }
  func.func @transform_6(%arg0: i32, %arg1: i32) -> (i32, i32) {
    %c0_i32 = arith.constant 0 : i32
    %c0_i32_0 = arith.constant 0 : i32
    %c0_i32_1 = arith.constant 0 : i32
    return %c0_i32, %c0_i32_0 : i32, i32
  }
  func.func @transform_7(%arg0: i32, %arg1: i32) -> (i32, i32) {
    %c0_i32 = arith.constant 0 : i32
    %c0_i32_0 = arith.constant 0 : i32
    return %arg0, %c0_i32 : i32, i32
  }
}

module attributes {stable_mosaic.version = 11 : i64} {
  func.func @_time_para_rnn_kernel(%arg0: i32, %arg1: i32, %arg2: memref<16x16xbf16, #tpu.memory_space<vmem>>, %arg3: memref<16x128xbf16, #tpu.memory_space<vmem>>, %arg4: memref<1x128xf32, #tpu.memory_space<vmem>>, %arg5: memref<128x128xbf16, #tpu.memory_space<vmem>>, %arg6: memref<1x128xf32, #tpu.memory_space<vmem>>, %arg7: memref<128x128xbf16, #tpu.memory_space<vmem>>, %arg8: memref<1x128xf32, #tpu.memory_space<vmem>>, %arg9: memref<16x128xf32, #tpu.memory_space<vmem>>, %arg10: memref<16x128xf32, #tpu.memory_space<vmem>>) attributes {dimension_semantics = [#tpu.dimension_semantics<parallel>, #tpu.dimension_semantics<arbitrary>], iteration_bounds = array<i64: 1, 1>, scalar_prefetch = 0 : i64, scratch_operands = 1 : i64, tpu.core_type = #tpu.core_type<tc>, window_params = [{transform_indices = @transform_0, window_bounds = array<i64: 16, 16>}, {transform_indices = @transform_1, window_bounds = array<i64: 16, 128>}, {transform_indices = @transform_2, window_bounds = array<i64: 1, 128>}, {transform_indices = @transform_3, window_bounds = array<i64: 128, 128>}, {pipeline_mode = #tpu.pipeline_mode<synchronous>, transform_indices = @transform_4, window_bounds = array<i64: 1, 128>}, {pipeline_mode = #tpu.pipeline_mode<synchronous>, transform_indices = @transform_5, window_bounds = array<i64: 128, 128>}, {pipeline_mode = #tpu.pipeline_mode<synchronous>, transform_indices = @transform_6, window_bounds = array<i64: 1, 128>}, {transform_indices = @transform_7, window_bounds = array<i64: 16, 128>}]} {
    %c0_i32 = arith.constant 0 : i32
    %0 = arith.cmpi eq, %arg1, %c0_i32 : i32
    %1 = arith.extui %0 : i1 to i32
    %c0_i32_0 = arith.constant 0 : i32
    %2 = arith.cmpi ne, %1, %c0_i32_0 : i32
    scf.if %2 {
      %cst_16 = arith.constant 0.000000e+00 : f32
      %20 = vector.broadcast %cst_16 : f32 to vector<16x128xf32>
      %c0_17 = arith.constant 0 : index
      %c0_18 = arith.constant 0 : index
      %21 = vector.load %arg10[%c0_17, %c0_18] : memref<16x128xf32, #tpu.memory_space<vmem>>, vector<16x128xf32>
      tpu.vector_store %arg10[%c0_17, %c0_18], %20 {strides = array<i32>} : memref<16x128xf32, #tpu.memory_space<vmem>>, vector<16x128xf32>,
    } else {
    }
    %c0 = arith.constant 0 : index
    %c0_1 = arith.constant 0 : index
    %3 = vector.load %arg2[%c0, %c0_1] : memref<16x16xbf16, #tpu.memory_space<vmem>>, vector<16x16xbf16>
    %c0_2 = arith.constant 0 : index
    %c0_3 = arith.constant 0 : index
    %4 = vector.load %arg3[%c0_2, %c0_3] : memref<16x128xbf16, #tpu.memory_space<vmem>>, vector<16x128xbf16>
    %cst = arith.constant dense<0.000000e+00> : vector<16x128xf32>
    %5 = tpu.matmul %3, %4, %cst {dimension_numbers = #tpu.dot_dimension_numbers<[1], [0], [0], [1], [0, 0, 1, 1], [], []>} : vector<16x16xbf16>, vector<16x128xbf16>, vector<16x128xf32> -> vector<16x128xf32>
    %c0_4 = arith.constant 0 : index
    %c0_5 = arith.constant 0 : index
    %6 = vector.load %arg4[%c0_4, %c0_5] : memref<1x128xf32, #tpu.memory_space<vmem>>, vector<1x128xf32>
    %7 = vector.broadcast %6 : vector<1x128xf32> to vector<16x128xf32>
    %8 = arith.addf %5, %7 : vector<16x128xf32>
    %cst_6 = arith.constant 0.000000e+00 : f32
    %9 = vector.broadcast %cst_6 : f32 to vector<16x128xf32>
    %10 = arith.maximumf %8, %9 : vector<16x128xf32>
    %11 = arith.truncf %10 : vector<16x128xf32> to vector<16x128xbf16>
    %c0_7 = arith.constant 0 : index
    %c0_8 = arith.constant 0 : index
    %12 = vector.load %arg10[%c0_7, %c0_8] : memref<16x128xf32, #tpu.memory_space<vmem>>, vector<16x128xf32>
    %c0_9 = arith.constant 0 : index
    %c0_10 = arith.constant 0 : index
    %13 = vector.load %arg5[%c0_9, %c0_10] : memref<128x128xbf16, #tpu.memory_space<vmem>>, vector<128x128xbf16>
    %cst_11 = arith.constant dense<0.000000e+00> : vector<16x128xf32>
    %14 = tpu.matmul %11, %13, %cst_11 {dimension_numbers = #tpu.dot_dimension_numbers<[1], [0], [0], [1], [0, 0, 1, 1], [], []>} : vector<16x128xbf16>, vector<128x128xbf16>, vector<16x128xf32> -> vector<16x128xf32>
    %15 = arith.addf %12, %14 : vector<16x128xf32>
    %c0_12 = arith.constant 0 : index
    %c0_13 = arith.constant 0 : index
    %16 = vector.load %arg10[%c0_12, %c0_13] : memref<16x128xf32, #tpu.memory_space<vmem>>, vector<16x128xf32>
    tpu.vector_store %arg10[%c0_12, %c0_13], %15 {strides = array<i32>} : memref<16x128xf32, #tpu.memory_space<vmem>>, vector<16x128xf32>,
    %c0_i32_14 = arith.constant 0 : i32
    %17 = arith.cmpi eq, %arg1, %c0_i32_14 : i32
    %18 = arith.extui %17 : i1 to i32
    %c0_i32_15 = arith.constant 0 : i32
    %19 = arith.cmpi ne, %18, %c0_i32_15 : i32
    scf.if %19 {
      %c0_16 = arith.constant 0 : index
      %c0_17 = arith.constant 0 : index
      %20 = vector.load %arg10[%c0_16, %c0_17] : memref<16x128xf32, #tpu.memory_space<vmem>>, vector<16x128xf32>
      %c0_18 = arith.constant 0 : index
      %c0_19 = arith.constant 0 : index
      %21 = vector.load %arg6[%c0_18, %c0_19] : memref<1x128xf32, #tpu.memory_space<vmem>>, vector<1x128xf32>
      %22 = vector.broadcast %21 : vector<1x128xf32> to vector<16x128xf32>
      %23 = arith.addf %20, %22 : vector<16x128xf32>
      %cst_20 = arith.constant 0.000000e+00 : f32
      %24 = vector.broadcast %cst_20 : f32 to vector<16x128xf32>
      %25 = arith.maximumf %23, %24 : vector<16x128xf32>
      %26 = arith.truncf %25 : vector<16x128xf32> to vector<16x128xbf16>
      %c0_21 = arith.constant 0 : index
      %c0_22 = arith.constant 0 : index
      %27 = vector.load %arg7[%c0_21, %c0_22] : memref<128x128xbf16, #tpu.memory_space<vmem>>, vector<128x128xbf16>
      %cst_23 = arith.constant dense<0.000000e+00> : vector<16x128xf32>
      %28 = tpu.matmul %26, %27, %cst_23 {dimension_numbers = #tpu.dot_dimension_numbers<[1], [0], [0], [1], [0, 0, 1, 1], [], []>} : vector<16x128xbf16>, vector<128x128xbf16>, vector<16x128xf32> -> vector<16x128xf32>
      %c0_24 = arith.constant 0 : index
      %c0_25 = arith.constant 0 : index
      %29 = vector.load %arg8[%c0_24, %c0_25] : memref<1x128xf32, #tpu.memory_space<vmem>>, vector<1x128xf32>
      %30 = vector.broadcast %29 : vector<1x128xf32> to vector<16x128xf32>
      %31 = arith.addf %28, %30 : vector<16x128xf32>
      %32 = tpu.iota {dimensions = array<i32: 1>} : vector<16x128xi32>
      %c32_i32 = arith.constant 32 : i32
      %33 = vector.broadcast %c32_i32 : i32 to vector<16x128xi32>
      %34 = arith.cmpi slt, %32, %33 : vector<16x128xi32>
      %35 = arith.mulf %31, %31 : vector<16x128xf32>
      %cst_26 = arith.constant 1.000000e-07 : f32
      %36 = vector.broadcast %cst_26 : f32 to vector<16x128xf32>
      %37 = arith.addf %35, %36 : vector<16x128xf32>
      %38 = arith.select %34, %37, %31 : vector<16x128xi1>, vector<16x128xf32>
      %c0_27 = arith.constant 0 : index
      %c0_28 = arith.constant 0 : index
      %39 = vector.load %arg9[%c0_27, %c0_28] : memref<16x128xf32, #tpu.memory_space<vmem>>, vector<16x128xf32>
      tpu.vector_store %arg9[%c0_27, %c0_28], %38 {strides = array<i32>} : memref<16x128xf32, #tpu.memory_space<vmem>>, vector<16x128xf32>,
    } else {
    }
    return
  }
  func.func @transform_0(%arg0: i32, %arg1: i32) -> (i32, i32) {
    %c0_i32 = arith.constant 0 : i32
    %c0_i32_0 = arith.constant 0 : i32
    return %arg0, %c0_i32 : i32, i32
  }
  func.func @transform_1(%arg0: i32, %arg1: i32) -> (i32, i32) {
    %c0_i32 = arith.constant 0 : i32
    %c0_i32_0 = arith.constant 0 : i32
    return %c0_i32, %arg1 : i32, i32
  }
  func.func @transform_2(%arg0: i32, %arg1: i32) -> (i32, i32) {
    %c0_i32 = arith.constant 0 : i32
    %c0_i32_0 = arith.constant 0 : i32
    return %c0_i32, %arg1 : i32, i32
  }
  func.func @transform_3(%arg0: i32, %arg1: i32) -> (i32, i32) {
    %c0_i32 = arith.constant 0 : i32
    %c0_i32_0 = arith.constant 0 : i32
    return %arg1, %c0_i32 : i32, i32
  }
  func.func @transform_4(%arg0: i32, %arg1: i32) -> (i32, i32) {
    %c0_i32 = arith.constant 0 : i32
    %c0_i32_0 = arith.constant 0 : i32
    %c0_i32_1 = arith.constant 0 : i32
    return %c0_i32, %c0_i32_0 : i32, i32
  }
  func.func @transform_5(%arg0: i32, %arg1: i32) -> (i32, i32) {
    %c0_i32 = arith.constant 0 : i32
    %c0_i32_0 = arith.constant 0 : i32
    %c0_i32_1 = arith.constant 0 : i32
    return %c0_i32, %c0_i32_0 : i32, i32
  }
  func.func @transform_6(%arg0: i32, %arg1: i32) -> (i32, i32) {
    %c0_i32 = arith.constant 0 : i32
    %c0_i32_0 = arith.constant 0 : i32
    %c0_i32_1 = arith.constant 0 : i32
    return %c0_i32, %c0_i32_0 : i32, i32
  }
  func.func @transform_7(%arg0: i32, %arg1: i32) -> (i32, i32) {
    %c0_i32 = arith.constant 0 : i32
    %c0_i32_0 = arith.constant 0 : i32
    return %arg0, %c0_i32 : i32, i32
  }
}

</mosaic_0001>

<bundles_post_ra>
// kernel: tpu_custom_call.1
= control target key start
LH: loop header
LB: loop body
LE: loop exit
PB: predicated region body
PF: predicated region fallthrough
CT: control target
= control target key end

     0   :  { %12 = vsyncpa [#allocation4], 0  ;;  %s653_s0 = inlined_call_operand.hbm [shape: bf16[16,16], index: 0, kind: input, shape index: {}]   ;;  %s654_s1 = inlined_call_operand.hbm [shape: bf16[16,128], index: 1, kind: input, shape index: {}]   ;;  %s655_s2 = inlined_call_operand.vmem [shape: f32[1,128], index: 2, kind: input, shape index: {}]   ;;  %s656_s3 = inlined_call_operand.hbm [shape: bf16[128,128], index: 3, kind: input, shape index: {}]   ;;  %s657_s4 = inlined_call_operand.vmem [shape: f32[1,128], index: 4, kind: input, shape index: {}]   ;;  %s658_s5 = inlined_call_operand.hbm [shape: bf16[128,128], index: 5, kind: input, shape index: {}]   ;;  %s659_s6 = inlined_call_operand.vmem [shape: f32[1,128], index: 6, kind: input, shape index: {}]   ;;  %s660_s7 = inlined_call_operand.hbm [shape: f32[16,128], index: 7, kind: output, shape index: {}]  }
   0x1   :  { %13 = vsyncpa [#allocation7], 0 }
   0x2   :  { %14 = vsyncpa [#allocation10], 0 }
   0x3   :  { %15 = vsyncpa [#allocation5], 0  ;;  %s33_s26 = sshll.u32 %s654_s1, 4  ;;  %s580_s27 = smov [#allocation6]   ;;  %s34_s26 = int_to_ptr.hbm [resolvable:$true] %s33_s26 }
   0x4   :  { %s35_s28 = sshll.u32 %s580_s27, 4  ;;  %s20_s8 = sshll.u32 %s653_s0, 4  ;;  %s36_s28 = int_to_ptr.vmem [resolvable:$true] %s35_s28  ;;  %s21_s8 = int_to_ptr.hbm [resolvable:$true] %s20_s8 }
   0x5   :  { %s581_s9 = smov 64   ;;  %s582_s10 = smov 4  }
   0x6   :  { %41 = dma.hbm_to_vmem [thread:$0]  %s34_s26, 128, %s36_s28, [#allocation7], %s581_s9, %s581_s9, %s582_s10  }
   0x7   :  { %s583_s11 = smov [#allocation3]   ;;  %s48_s15 = sshll.u32 %s656_s3, 4  ;;  %s49_s15 = int_to_ptr.hbm [resolvable:$true] %s48_s15 }
   0x8   :  { %s22_s12 = sshll.u32 %s583_s11, 4  ;;  %s63_s17 = sshll.u32 %s658_s5, 4  ;;  %s23_s12 = int_to_ptr.vmem [resolvable:$true] %s22_s12  ;;  %s64_s17 = int_to_ptr.hbm [resolvable:$true] %s63_s17 }
   0x9   :  { %28 = dma.hbm_to_vmem [thread:$0]  %s21_s8, 128, %s23_s12, [#allocation4], %s581_s9, %s581_s9, %s582_s10  }
   0xa   :  { %s584_s18 = smov [#allocation8]   ;;  %s585_s0 = smov [#allocation9]  }
   0xb   :  { %s50_s19 = sshll.u32 %s584_s18, 4  ;;  %s65_s20 = sshll.u32 %s585_s0, 4  ;;  %s51_s19 = int_to_ptr.vmem [resolvable:$true] %s50_s19  ;;  %s66_s20 = int_to_ptr.vmem [resolvable:$true] %s65_s20 }
   0xc   :  { %56 = dma.hbm_to_vmem [thread:$0]  %s49_s15, 1024, %s51_s19, [#allocation7], %s581_s9, %s581_s9, %s582_s10  }
   0xd   :  { %71 = dma.hbm_to_vmem [thread:$0]  %s64_s17, 1024, %s66_s20, [#allocation10], %s581_s9, %s581_s9, %s582_s10  }
   0xe   :  { %572 = dma.done.wait [#allocation4], 128  }
   0xf   :  { %573 = vsyncadd [#allocation4], 4294967168 }
  0x10   :  { %574 = dma.done.wait [#allocation7], 1152  }
  0x11   :  { %575 = vsyncadd [#allocation7], 4294966144 }
  0x12   :  { %576 = dma.done.wait [#allocation10], 1024  }
  0x13   :  { %577 = vsyncadd [#allocation10], 4294966272  ;;  %v423_v0 = vld [vmem:[#allocation6] sm:$0xff]  ;;  %v422_v2 = vld [vmem:[#allocation3] sm:$0xff]  ;;  %vm116_vm0 = vcmask 130048   ;;  %v317_v34 = vlaneseq  ;;  %s334_s27 = sshll.u32 %s660_s7, 4  ;;  %s335_s27 = int_to_ptr.hbm [resolvable:$true] %s334_s27 }
  0x14   :  { %v431_v1 = vld [vmem:[#allocation8 + $0x38] sm:$0xff]  ;;  %127 = vmatpush.bf16.msra.mxu0 %v423_v0  ;;  %v430_v3 = vld [vmem:[#allocation8 + $0x30] sm:$0xff]  ;;  %v429_v4 = vld [vmem:[#allocation8 + $0x28] sm:$0xff]  ;;  %s588_s28 = smov 8  }
  0x15   :  { %203 = vmatpush.bf16.msra.mxu1 %v431_v1  ;;  %v428_v5 = vld [vmem:[#allocation8 + $0x20] sm:$0xff]  ;;  %v427_v6 = vld [vmem:[#allocation8 + $0x18] sm:$0xff]  ;;  %v426_v7 = vld [vmem:[#allocation8 + $0x10] sm:$0xff]  ;;  %v318_v37 = vand.u32 127, %v317_v34 }
  0x16   :  { %v425_v8 = vld [vmem:[#allocation8 + $0x8] sm:$0xff]  ;;  %v424_v9 = vld [vmem:[#allocation8] sm:$0xff]  ;;  %v439_v10 = vld [vmem:[#allocation9 + $0x38] sm:$0xff] }
  0x17   :  { %357 = vmatmul.msk.bf16.vlgmr.msra.gmra.mxu0 %vm116_vm0, %v422_v2  ;;  %303 = vmatpush.bf16.msra.mxu2 %v439_v10  ;;  %v438_v11 = vld [vmem:[#allocation9 + $0x30] sm:$0xff]  ;;  %v437_v12 = vld [vmem:[#allocation9 + $0x28] sm:$0xff]  ;;  %v436_v13 = vld [vmem:[#allocation9 + $0x20] sm:$0xff]  ;;  %vm319_vm1 = vcmp.lt.s32.totalorder %v318_v37, 32 }
  0x18   :  { %v449_v15 = vld [vmem:[%s655_s2] ss:$0 sm:$0xff]  ;;  %v435_v22 = vld [vmem:[#allocation9 + $0x18] sm:$0xff]  ;;  %v433_v24 = vld [vmem:[#allocation9 + $0x8] sm:$0xff] }
  0x19   :  { %204 = vmatpush.bf16.msra.mxu1 %v430_v3  ;;  %v434_v23 = vld [vmem:[#allocation9 + $0x10] sm:$0xff]  ;;  %v432_v25 = vld [vmem:[#allocation9] sm:$0xff] }
  0x1a   :  { %v450_v27 = vld [vmem:[%s657_s4] ss:$0 sm:$0xff]  ;;  %s586_s4 = smov [#allocation11]  }
  0x1b   :  { %304 = vmatpush.bf16.msra.mxu2 %v438_v11  ;;  %v451_v35 = vld [vmem:[%s659_s6] ss:$0 sm:$0xff]  ;;  %s332_s24 = sshll.u32 %s586_s4, 4  ;;  %s587_s6 = smov 128   ;;  %s333_s24 = int_to_ptr.vmem [resolvable:$true] %s332_s24 }
  0x1d   :  { %205 = vmatpush.bf16.msra.mxu1 %v429_v4 }
  0x1f   :  { %305 = vmatpush.bf16.msra.mxu2 %v437_v12 }
  0x21   :  { %206 = vmatpush.bf16.msra.mxu1 %v428_v5 }
  0x23   :  { %306 = vmatpush.bf16.msra.mxu2 %v436_v13 }
  0x25   :  { %207 = vmatpush.bf16.msra.mxu1 %v427_v6 }
  0x27   :  { %307 = vmatpush.bf16.msra.mxu2 %v435_v22 }
  0x29   :  { %208 = vmatpush.bf16.msra.mxu1 %v426_v7 }
  0x2b   :  { %308 = vmatpush.bf16.msra.mxu2 %v434_v23 }
  0x2d   :  { %209 = vmatpush.bf16.msra.mxu1 %v425_v8 }
  0x2f   :  { %309 = vmatpush.bf16.msra.mxu2 %v433_v24 }
  0x31   :  { %210 = vmatpush.bf16.msra.mxu1 %v424_v9 }
  0x33   :  { %310 = vmatpush.bf16.msra.mxu2 %v432_v25 }
  0x94   :  { %v129_v14 = vpop.f32.mrf.mxu0 }
  0x95   :  { %v130_v16 = vadd.f32 %v449_v15, %v129_v14 }
  0x97   :  { %v134_v19 = vmax.f32 %v130_v16, 0.0 }
  0x9c   :  { %v131_v17 = vpop.f32.mrf.mxu0 }
  0x9d   :  { %v132_v18 = vadd.f32 %v449_v15, %v131_v17 }
  0x9f   :  { %v135_v20 = vmax.f32 %v132_v18, 0.0 }
  0xa1   :  { %v136_v21 = vpack.c.bf16 %v135_v20, %v134_v19 }
  0xa3   :  { %211 = vmatmul.bf16.vlgmr.msra.gmra.mxu1 %v136_v21 }
 0x120   :  { %v212_v26 = vpop.f32.mrf.mxu1 }
 0x121   :  { %v230_v28 = vadd.f32 %v450_v27, %v212_v26 }
 0x123   :  { %v232_v31 = vmax.f32 %v230_v28, 0.0 }
 0x128   :  { %v214_v29 = vpop.f32.mrf.mxu1 }
 0x129   :  { %v231_v30 = vadd.f32 %v450_v27, %v214_v29 }
 0x12b   :  { %v233_v32 = vmax.f32 %v231_v30, 0.0 }
 0x12d   :  { %v234_v33 = vpack.c.bf16 %v233_v32, %v232_v31 }
 0x12f   :  { %311 = vmatmul.bf16.vlgmr.msra.gmra.mxu2 %v234_v33 }
 0x1b2   :  { %v312_v36 = vpop.f32.mrf.mxu2 }
 0x1b3   :  { %v313_v38 = vadd.f32 %v451_v35, %v312_v36 }
 0x1b5   :  { %v320_v39 = vmul.f32 %v313_v38, %v313_v38 }
 0x1b7   :  { %v322_v40 = vadd.f32 1e-07, %v320_v39 }
 0x1b9   :  { %v324_v41 = vsel %vm319_vm1, %v322_v40, %v313_v38 }
 0x1ba   :  { %326 = vst [vmem:[#allocation11] sm:$0xff] %v324_v41  ;;  %v314_v42 = vpop.f32.mrf.mxu2 }
 0x1bb   :  { %v315_v43 = vadd.f32 %v451_v35, %v314_v42 }
 0x1bd   :  { %v321_v44 = vmul.f32 %v315_v43, %v315_v43 }
 0x1bf   :  { %v323_v45 = vadd.f32 1e-07, %v321_v44 }
 0x1c1   :  { %v325_v46 = vsel %vm319_vm1, %v323_v45, %v315_v43 }
 0x1c2   :  { %327 = vst [vmem:[#allocation11 + $0x8] sm:$0xff] %v325_v46 }
 0x1c3   :  { %340 = dma.vmem_to_hbm [thread:$0]  %s333_s24, 256, %s335_s27, [#allocation5], %s587_s6, %s587_s6, %s588_s28  }
 0x1c4   :  { %578 = dma.done.wait [#allocation5], 256  }
 0x1c5   :  { %579 = vsyncadd [#allocation5], 4294967040 }
 0x1c6   :  { %345 = vsyncpa [#allocation4], 1 }
 0x1c7   :  { %346 = vsyncpa [#allocation7], 1 }
 0x1c8   :  { %347 = vsyncpa [#allocation10], 1 }
 0x1c9   :  { %348 = vsyncpa [#allocation5], 1 }

// kernel: tpu_custom_call.1
= control target key start
LH: loop header
LB: loop body
LE: loop exit
PB: predicated region body
PF: predicated region fallthrough
CT: control target
= control target key end

     0   :  { %12 = vsyncpa [#allocation4], 0  ;;  %s653_s0 = inlined_call_operand.hbm [shape: bf16[16,16], index: 0, kind: input, shape index: {}]   ;;  %s654_s1 = inlined_call_operand.hbm [shape: bf16[16,128], index: 1, kind: input, shape index: {}]   ;;  %s655_s2 = inlined_call_operand.vmem [shape: f32[1,128], index: 2, kind: input, shape index: {}]   ;;  %s656_s3 = inlined_call_operand.hbm [shape: bf16[128,128], index: 3, kind: input, shape index: {}]   ;;  %s657_s4 = inlined_call_operand.vmem [shape: f32[1,128], index: 4, kind: input, shape index: {}]   ;;  %s658_s5 = inlined_call_operand.hbm [shape: bf16[128,128], index: 5, kind: input, shape index: {}]   ;;  %s659_s6 = inlined_call_operand.vmem [shape: f32[1,128], index: 6, kind: input, shape index: {}]   ;;  %s660_s7 = inlined_call_operand.hbm [shape: f32[16,128], index: 7, kind: output, shape index: {}]  }
   0x1   :  { %13 = vsyncpa [#allocation7], 0 }
   0x2   :  { %14 = vsyncpa [#allocation10], 0 }
   0x3   :  { %15 = vsyncpa [#allocation5], 0  ;;  %s33_s26 = sshll.u32 %s654_s1, 4  ;;  %s580_s27 = smov [#allocation6]   ;;  %s34_s26 = int_to_ptr.hbm [resolvable:$true] %s33_s26 }
   0x4   :  { %s35_s28 = sshll.u32 %s580_s27, 4  ;;  %s20_s8 = sshll.u32 %s653_s0, 4  ;;  %s36_s28 = int_to_ptr.vmem [resolvable:$true] %s35_s28  ;;  %s21_s8 = int_to_ptr.hbm [resolvable:$true] %s20_s8 }
   0x5   :  { %s581_s9 = smov 64   ;;  %s582_s10 = smov 4  }
   0x6   :  { %41 = dma.hbm_to_vmem [thread:$0]  %s34_s26, 128, %s36_s28, [#allocation7], %s581_s9, %s581_s9, %s582_s10  }
   0x7   :  { %s583_s11 = smov [#allocation3]   ;;  %s48_s15 = sshll.u32 %s656_s3, 4  ;;  %s49_s15 = int_to_ptr.hbm [resolvable:$true] %s48_s15 }
   0x8   :  { %s22_s12 = sshll.u32 %s583_s11, 4  ;;  %s63_s17 = sshll.u32 %s658_s5, 4  ;;  %s23_s12 = int_to_ptr.vmem [resolvable:$true] %s22_s12  ;;  %s64_s17 = int_to_ptr.hbm [resolvable:$true] %s63_s17 }
   0x9   :  { %28 = dma.hbm_to_vmem [thread:$0]  %s21_s8, 128, %s23_s12, [#allocation4], %s581_s9, %s581_s9, %s582_s10  }
   0xa   :  { %s584_s18 = smov [#allocation8]   ;;  %s585_s0 = smov [#allocation9]  }
   0xb   :  { %s50_s19 = sshll.u32 %s584_s18, 4  ;;  %s65_s20 = sshll.u32 %s585_s0, 4  ;;  %s51_s19 = int_to_ptr.vmem [resolvable:$true] %s50_s19  ;;  %s66_s20 = int_to_ptr.vmem [resolvable:$true] %s65_s20 }
   0xc   :  { %56 = dma.hbm_to_vmem [thread:$0]  %s49_s15, 1024, %s51_s19, [#allocation7], %s581_s9, %s581_s9, %s582_s10  }
   0xd   :  { %71 = dma.hbm_to_vmem [thread:$0]  %s64_s17, 1024, %s66_s20, [#allocation10], %s581_s9, %s581_s9, %s582_s10  }
   0xe   :  { %572 = dma.done.wait [#allocation4], 128  }
   0xf   :  { %573 = vsyncadd [#allocation4], 4294967168 }
  0x10   :  { %574 = dma.done.wait [#allocation7], 1152  }
  0x11   :  { %575 = vsyncadd [#allocation7], 4294966144 }
  0x12   :  { %576 = dma.done.wait [#allocation10], 1024  }
  0x13   :  { %577 = vsyncadd [#allocation10], 4294966272  ;;  %v423_v0 = vld [vmem:[#allocation6] sm:$0xff]  ;;  %v422_v2 = vld [vmem:[#allocation3] sm:$0xff]  ;;  %vm116_vm0 = vcmask 130048   ;;  %v317_v34 = vlaneseq  ;;  %s334_s27 = sshll.u32 %s660_s7, 4  ;;  %s335_s27 = int_to_ptr.hbm [resolvable:$true] %s334_s27 }
  0x14   :  { %v431_v1 = vld [vmem:[#allocation8 + $0x38] sm:$0xff]  ;;  %127 = vmatpush.bf16.msra.mxu0 %v423_v0  ;;  %v430_v3 = vld [vmem:[#allocation8 + $0x30] sm:$0xff]  ;;  %v429_v4 = vld [vmem:[#allocation8 + $0x28] sm:$0xff]  ;;  %s588_s28 = smov 8  }
  0x15   :  { %203 = vmatpush.bf16.msra.mxu1 %v431_v1  ;;  %v428_v5 = vld [vmem:[#allocation8 + $0x20] sm:$0xff]  ;;  %v427_v6 = vld [vmem:[#allocation8 + $0x18] sm:$0xff]  ;;  %v426_v7 = vld [vmem:[#allocation8 + $0x10] sm:$0xff]  ;;  %v318_v37 = vand.u32 127, %v317_v34 }
  0x16   :  { %v425_v8 = vld [vmem:[#allocation8 + $0x8] sm:$0xff]  ;;  %v424_v9 = vld [vmem:[#allocation8] sm:$0xff]  ;;  %v439_v10 = vld [vmem:[#allocation9 + $0x38] sm:$0xff] }
  0x17   :  { %357 = vmatmul.msk.bf16.vlgmr.msra.gmra.mxu0 %vm116_vm0, %v422_v2  ;;  %303 = vmatpush.bf16.msra.mxu2 %v439_v10  ;;  %v438_v11 = vld [vmem:[#allocation9 + $0x30] sm:$0xff]  ;;  %v437_v12 = vld [vmem:[#allocation9 + $0x28] sm:$0xff]  ;;  %v436_v13 = vld [vmem:[#allocation9 + $0x20] sm:$0xff]  ;;  %vm319_vm1 = vcmp.lt.s32.totalorder %v318_v37, 32 }
  0x18   :  { %v449_v15 = vld [vmem:[%s655_s2] ss:$0 sm:$0xff]  ;;  %v435_v22 = vld [vmem:[#allocation9 + $0x18] sm:$0xff]  ;;  %v433_v24 = vld [vmem:[#allocation9 + $0x8] sm:$0xff] }
  0x19   :  { %204 = vmatpush.bf16.msra.mxu1 %v430_v3  ;;  %v434_v23 = vld [vmem:[#allocation9 + $0x10] sm:$0xff]  ;;  %v432_v25 = vld [vmem:[#allocation9] sm:$0xff] }
  0x1a   :  { %v450_v27 = vld [vmem:[%s657_s4] ss:$0 sm:$0xff]  ;;  %s586_s4 = smov [#allocation11]  }
  0x1b   :  { %304 = vmatpush.bf16.msra.mxu2 %v438_v11  ;;  %v451_v35 = vld [vmem:[%s659_s6] ss:$0 sm:$0xff]  ;;  %s332_s24 = sshll.u32 %s586_s4, 4  ;;  %s587_s6 = smov 128   ;;  %s333_s24 = int_to_ptr.vmem [resolvable:$true] %s332_s24 }
  0x1d   :  { %205 = vmatpush.bf16.msra.mxu1 %v429_v4 }
  0x1f   :  { %305 = vmatpush.bf16.msra.mxu2 %v437_v12 }
  0x21   :  { %206 = vmatpush.bf16.msra.mxu1 %v428_v5 }
  0x23   :  { %306 = vmatpush.bf16.msra.mxu2 %v436_v13 }
  0x25   :  { %207 = vmatpush.bf16.msra.mxu1 %v427_v6 }
  0x27   :  { %307 = vmatpush.bf16.msra.mxu2 %v435_v22 }
  0x29   :  { %208 = vmatpush.bf16.msra.mxu1 %v426_v7 }
  0x2b   :  { %308 = vmatpush.bf16.msra.mxu2 %v434_v23 }
  0x2d   :  { %209 = vmatpush.bf16.msra.mxu1 %v425_v8 }
  0x2f   :  { %309 = vmatpush.bf16.msra.mxu2 %v433_v24 }
  0x31   :  { %210 = vmatpush.bf16.msra.mxu1 %v424_v9 }
  0x33   :  { %310 = vmatpush.bf16.msra.mxu2 %v432_v25 }
  0x94   :  { %v129_v14 = vpop.f32.mrf.mxu0 }
  0x95   :  { %v130_v16 = vadd.f32 %v449_v15, %v129_v14 }
  0x97   :  { %v134_v19 = vmax.f32 %v130_v16, 0.0 }
  0x9c   :  { %v131_v17 = vpop.f32.mrf.mxu0 }
  0x9d   :  { %v132_v18 = vadd.f32 %v449_v15, %v131_v17 }
  0x9f   :  { %v135_v20 = vmax.f32 %v132_v18, 0.0 }
  0xa1   :  { %v136_v21 = vpack.c.bf16 %v135_v20, %v134_v19 }
  0xa3   :  { %211 = vmatmul.bf16.vlgmr.msra.gmra.mxu1 %v136_v21 }
 0x120   :  { %v212_v26 = vpop.f32.mrf.mxu1 }
 0x121   :  { %v230_v28 = vadd.f32 %v450_v27, %v212_v26 }
 0x123   :  { %v232_v31 = vmax.f32 %v230_v28, 0.0 }
 0x128   :  { %v214_v29 = vpop.f32.mrf.mxu1 }
 0x129   :  { %v231_v30 = vadd.f32 %v450_v27, %v214_v29 }
 0x12b   :  { %v233_v32 = vmax.f32 %v231_v30, 0.0 }
 0x12d   :  { %v234_v33 = vpack.c.bf16 %v233_v32, %v232_v31 }
 0x12f   :  { %311 = vmatmul.bf16.vlgmr.msra.gmra.mxu2 %v234_v33 }
 0x1b2   :  { %v312_v36 = vpop.f32.mrf.mxu2 }
 0x1b3   :  { %v313_v38 = vadd.f32 %v451_v35, %v312_v36 }
 0x1b5   :  { %v320_v39 = vmul.f32 %v313_v38, %v313_v38 }
 0x1b7   :  { %v322_v40 = vadd.f32 1e-07, %v320_v39 }
 0x1b9   :  { %v324_v41 = vsel %vm319_vm1, %v322_v40, %v313_v38 }
 0x1ba   :  { %326 = vst [vmem:[#allocation11] sm:$0xff] %v324_v41  ;;  %v314_v42 = vpop.f32.mrf.mxu2 }
 0x1bb   :  { %v315_v43 = vadd.f32 %v451_v35, %v314_v42 }
 0x1bd   :  { %v321_v44 = vmul.f32 %v315_v43, %v315_v43 }
 0x1bf   :  { %v323_v45 = vadd.f32 1e-07, %v321_v44 }
 0x1c1   :  { %v325_v46 = vsel %vm319_vm1, %v323_v45, %v315_v43 }
 0x1c2   :  { %327 = vst [vmem:[#allocation11 + $0x8] sm:$0xff] %v325_v46 }
 0x1c3   :  { %340 = dma.vmem_to_hbm [thread:$0]  %s333_s24, 256, %s335_s27, [#allocation5], %s587_s6, %s587_s6, %s588_s28  }
 0x1c4   :  { %578 = dma.done.wait [#allocation5], 256  }
 0x1c5   :  { %579 = vsyncadd [#allocation5], 4294967040 }
 0x1c6   :  { %345 = vsyncpa [#allocation4], 1 }
 0x1c7   :  { %346 = vsyncpa [#allocation7], 1 }
 0x1c8   :  { %347 = vsyncpa [#allocation10], 1 }
 0x1c9   :  { %348 = vsyncpa [#allocation5], 1 }

</bundles_post_ra>
